<compile_context>
chip_gen: v5e
topology: v5e:2x2
jax: 0.10.0
libtpu: 0.0.40
codegen_flags: <defaults>
</compile_context>

<pallas_src>
import jax
import jax.numpy as jnp
from jax.experimental import pallas as pl
from jax.experimental.pallas import tpu as pltpu


_TILE_BYTES_PER_INPUT = 8 * 1024 * 1024   # 2 inputs x 2 bufs -> 32 MiB pipeline
_VMEM_LIMIT_BYTES = 48 * 1024 * 1024      # < 64 MiB physical VMEM on v7x


def _f1_loss_kernel(x_ref, y_ref, tp_out, p_out, y_out, tp_acc, p_acc, y_acc):
    j = pl.program_id(1)

    @pl.when(j == 0)
    def _init():
        tp_acc[...] = jnp.zeros_like(tp_acc)
        p_acc[...] = jnp.zeros_like(p_acc)
        y_acc[...] = jnp.zeros_like(y_acc)

    x = x_ref[...].astype(jnp.float32)
    y = y_ref[...].astype(jnp.float32)

    # sigmoid(x) = 1 / (1 + exp(-x)); exp on the EUP, approx reciprocal also on
    # the EUP slot -> VALU stays free for the adds/muls below.
    p = pl.reciprocal(1.0 + jnp.exp(-x), approx=True)

    # Vreg-shaped partial sums: fold the (TB, TL) tile over the sublane axis
    # only (VPU vreg adds + one in-vreg fold per lane column).  The cross-lane
    # reduce to a scalar is deferred to the finalize branch.
    tp_acc[...] += jnp.sum(y * p, axis=0, keepdims=True)
    p_acc[...] += jnp.sum(p, axis=0, keepdims=True)
    y_acc[...] += jnp.sum(y, axis=0, keepdims=True)

    @pl.when(j == pl.num_programs(1) - 1)
    def _finalize():
        tp_out[...] = jnp.sum(tp_acc[...], keepdims=True).reshape(1, 1, 1)
        p_out[...] = jnp.sum(p_acc[...], keepdims=True).reshape(1, 1, 1)
        y_out[...] = jnp.sum(y_acc[...], keepdims=True).reshape(1, 1, 1)


def _round_up(x, m):
    return ((x + m - 1) // m) * m


def _sublane_unit(dtype):
    # 8 rows for 32-bit, 16 for 16-bit, 32 for 8-bit (packed sublane tiling).
    itemsize = jnp.dtype(dtype).itemsize
    return max(8, 32 // max(1, itemsize))


def f1_loss(inputs, targets, *, epsilon=1e-7, block_rows=None, block_cols=None):
    """Pallas implementation of F1_Loss.forward.

    inputs, targets: [batch, seq_len] arrays (any float/int dtype; cast to f32
    in-kernel). Returns a scalar loss.
    """
    if inputs.ndim != 2 or inputs.shape != targets.shape:
        raise ValueError("inputs/targets must both be [batch, seq_len]")
    B, L = inputs.shape

    itemsize = max(jnp.dtype(inputs.dtype).itemsize,
                   jnp.dtype(targets.dtype).itemsize)
    sub = max(_sublane_unit(inputs.dtype), _sublane_unit(targets.dtype))
    elem_cap = max(sub * 128, _TILE_BYTES_PER_INPUT // itemsize)

    # Lane (seq) tile first, then sublane (batch) tile, targeting ~8 MiB per
    # input tile so the grid-step overhead is amortized and the pipeline
    # footprint (2 inputs x 2 buffers) stays within v7x's VMEM.
    if block_cols is not None:
        TL = _round_up(int(block_cols), 128)
    else:
        TL = min(_round_up(L, 128), max(128, (elem_cap // sub) // 128 * 128))
    if block_rows is not None:
        TB = _round_up(int(block_rows), sub)
    else:
        TB = min(_round_up(B, sub), max(sub, (elem_cap // TL) // sub * sub))

    B_pad, L_pad = _round_up(B, TB), _round_up(L, TL)
    x, y = inputs, targets
    if (B_pad, L_pad) != (B, L):
        # Padding leaves all three sums unchanged: sigmoid(-80) ~ 1.8e-35 ~ 0,
        # targets padded with 0.
        x = jnp.pad(x, ((0, B_pad - B), (0, L_pad - L)), constant_values=-80.0)
        y = jnp.pad(y, ((0, B_pad - B), (0, L_pad - L)), constant_values=0)
    nb, nl = B_pad // TB, L_pad // TL

    out_shapes = (
        jax.ShapeDtypeStruct((nb, 1, 1), jnp.float32),  # tp per row block
        jax.ShapeDtypeStruct((nb, 1, 1), jnp.float32),  # sum(p) per row block
        jax.ShapeDtypeStruct((nb, 1, 1), jnp.float32),  # sum(targets) per row block
    )

    tp_parts, p_parts, y_parts = pl.pallas_call(
        _f1_loss_kernel,
        out_shape=out_shapes,
        grid_spec=pltpu.PrefetchScalarGridSpec(
            num_scalar_prefetch=0,
            grid=(nb, nl),
            in_specs=[
                pl.BlockSpec((TB, TL), lambda i, j: (i, j)),
                pl.BlockSpec((TB, TL), lambda i, j: (i, j)),
            ],
            out_specs=(
                pl.BlockSpec((1, 1, 1), lambda i, j: (i, 0, 0)),
                pl.BlockSpec((1, 1, 1), lambda i, j: (i, 0, 0)),
                pl.BlockSpec((1, 1, 1), lambda i, j: (i, 0, 0)),
            ),
            scratch_shapes=[
                pltpu.VMEM((1, TL), jnp.float32),  # running sum(targets * p)
                pltpu.VMEM((1, TL), jnp.float32),  # running sum(p)
                pltpu.VMEM((1, TL), jnp.float32),  # running sum(targets)
            ],
        ),
        compiler_params=pltpu.CompilerParams(
            dimension_semantics=("parallel", "arbitrary"),
            vmem_limit_bytes=_VMEM_LIMIT_BYTES,
        ),
    )(x, y)

    # Tiny finalize over the nb partials in plain JAX.
    tp = jnp.sum(tp_parts)
    sp = jnp.sum(p_parts)
    sy = jnp.sum(y_parts)
    fp = sp - tp
    fn = sy - tp
    eps = jnp.float32(epsilon)
    precision = tp / (tp + fp + eps)
    recall = tp / (tp + fn + eps)
    f1 = 2.0 * precision * recall / (precision + recall + eps)
    return 1.0 - f1


def _reference(inputs, targets, epsilon=1e-7):
    p = 1.0 / (1.0 + jnp.exp(-inputs.astype(jnp.float32)))
    t = targets.astype(jnp.float32)
    tp = jnp.sum(t * p)
    fp = jnp.sum((1.0 - t) * p)
    fn = jnp.sum(t * (1.0 - p))
    precision = tp / (tp + fp + epsilon)
    recall = tp / (tp + fn + epsilon)
    f1 = 2.0 * precision * recall / (precision + recall + epsilon)
    return 1.0 - f1


if __name__ == "__main__":
    key = jax.random.PRNGKey(0)
    ks = jax.random.split(key, 6)

    # Tolerance note: the kernel uses the EUP approximate reciprocal for the
    # sigmoid denominator, so comparisons against the exact-divide reference
    # use a modest tolerance.  Test data is intentionally heterogeneous across
    # batch rows so per-block accounting errors would not cancel in the ratios.
    TOL = 1e-2

    # Case 1: single grid step (blocks cover the full array).
    B1, L1 = 16, 256
    x1 = jax.random.normal(ks[0], (B1, L1), dtype=jnp.float32)
    y1 = (jax.random.uniform(ks[1], (B1, L1)) >
          jnp.linspace(0.2, 0.8, B1)[:, None]).astype(jnp.float32)
    out1 = f1_loss(x1, y1)
    jax.block_until_ready(out1)
    ref1 = _reference(x1, y1)
    assert jnp.allclose(out1, ref1, rtol=TOL, atol=TOL), (out1, ref1)

    # Case 2: explicit small tiles -> 4 x 2 grid; exercises the per-row-block
    # accumulator init/finalize, the multi-step seq reduction, and the
    # parallel batch axis.
    B2, L2 = 32, 256
    x2 = (jax.random.normal(ks[2], (B2, L2), dtype=jnp.float32)
          + jnp.linspace(-2.0, 2.0, B2)[:, None])
    y2 = (jax.random.uniform(ks[3], (B2, L2)) >
          jnp.linspace(0.1, 0.9, B2)[:, None]).astype(jnp.float32)
    out2 = f1_loss(x2, y2, block_rows=8, block_cols=128)
    jax.block_until_ready(out2)
    ref2 = _reference(x2, y2)
    assert jnp.allclose(out2, ref2, rtol=TOL, atol=TOL), (out2, ref2)

    # Case 3: non-divisible shape -> exercises wrapper-side padding
    # (x padded with -80, targets with 0; sums unchanged).
    B3, L3 = 10, 200
    x3 = (jax.random.normal(ks[4], (B3, L3), dtype=jnp.float32)
          + jnp.linspace(-1.0, 1.0, B3)[:, None])
    y3 = (jax.random.uniform(ks[5], (B3, L3)) >
          jnp.linspace(0.3, 0.7, B3)[:, None]).astype(jnp.float32)
    out3 = f1_loss(x3, y3)
    jax.block_until_ready(out3)
    ref3 = _reference(x3, y3)
    assert jnp.allclose(out3, ref3, rtol=TOL, atol=TOL), (out3, ref3)

    print("KERNEL_OK")
</pallas_src>

<mosaic_0001>
module attributes {stable_mosaic.version = 11 : i64} {
  func.func @_f1_loss_kernel(%arg0: i32, %arg1: i32, %arg2: memref<16x256xf32, #tpu.memory_space<vmem>>, %arg3: memref<16x256xf32, #tpu.memory_space<vmem>>, %arg4: memref<1x1x1xf32, #tpu.memory_space<vmem>>, %arg5: memref<1x1x1xf32, #tpu.memory_space<vmem>>, %arg6: memref<1x1x1xf32, #tpu.memory_space<vmem>>, %arg7: memref<1x256xf32, #tpu.memory_space<vmem>>, %arg8: memref<1x256xf32, #tpu.memory_space<vmem>>, %arg9: memref<1x256xf32, #tpu.memory_space<vmem>>) attributes {dimension_semantics = [#tpu.dimension_semantics<parallel>, #tpu.dimension_semantics<arbitrary>], iteration_bounds = array<i64: 1, 1>, scalar_prefetch = 0 : i64, scratch_operands = 3 : i64, tpu.core_type = #tpu.core_type<tc>, window_params = [{transform_indices = @transform_0, window_bounds = array<i64: 16, 256>}, {transform_indices = @transform_1, window_bounds = array<i64: 16, 256>}, {transform_indices = @transform_2, window_bounds = array<i64: 1, 1, 1>}, {transform_indices = @transform_3, window_bounds = array<i64: 1, 1, 1>}, {transform_indices = @transform_4, window_bounds = array<i64: 1, 1, 1>}]} {
    %c0_i32 = arith.constant 0 : i32
    %0 = arith.cmpi eq, %arg1, %c0_i32 : i32
    %1 = arith.extui %0 : i1 to i32
    %c0_i32_0 = arith.constant 0 : i32
    %2 = arith.cmpi ne, %1, %c0_i32_0 : i32
    scf.if %2 {
      %cst_22 = arith.constant 0.000000e+00 : f32
      %30 = vector.broadcast %cst_22 : f32 to vector<1x256xf32>
      %c0_23 = arith.constant 0 : index
      %c0_24 = arith.constant 0 : index
      %31 = vector.load %arg7[%c0_23, %c0_24] : memref<1x256xf32, #tpu.memory_space<vmem>>, vector<1x256xf32>
      tpu.vector_store %arg7[%c0_23, %c0_24], %30 {strides = array<i32>} : memref<1x256xf32, #tpu.memory_space<vmem>>, vector<1x256xf32>,
      %cst_25 = arith.constant 0.000000e+00 : f32
      %32 = vector.broadcast %cst_25 : f32 to vector<1x256xf32>
      %c0_26 = arith.constant 0 : index
      %c0_27 = arith.constant 0 : index
      %33 = vector.load %arg8[%c0_26, %c0_27] : memref<1x256xf32, #tpu.memory_space<vmem>>, vector<1x256xf32>
      tpu.vector_store %arg8[%c0_26, %c0_27], %32 {strides = array<i32>} : memref<1x256xf32, #tpu.memory_space<vmem>>, vector<1x256xf32>,
      %cst_28 = arith.constant 0.000000e+00 : f32
      %34 = vector.broadcast %cst_28 : f32 to vector<1x256xf32>
      %c0_29 = arith.constant 0 : index
      %c0_30 = arith.constant 0 : index
      %35 = vector.load %arg9[%c0_29, %c0_30] : memref<1x256xf32, #tpu.memory_space<vmem>>, vector<1x256xf32>
      tpu.vector_store %arg9[%c0_29, %c0_30], %34 {strides = array<i32>} : memref<1x256xf32, #tpu.memory_space<vmem>>, vector<1x256xf32>,
    } else {
    }
    %c0 = arith.constant 0 : index
    %c0_1 = arith.constant 0 : index
    %3 = vector.load %arg2[%c0, %c0_1] : memref<16x256xf32, #tpu.memory_space<vmem>>, vector<16x256xf32>
    %c0_2 = arith.constant 0 : index
    %c0_3 = arith.constant 0 : index
    %4 = vector.load %arg3[%c0_2, %c0_3] : memref<16x256xf32, #tpu.memory_space<vmem>>, vector<16x256xf32>
    %cst = arith.constant 0.000000e+00 : f32
    %5 = vector.broadcast %cst : f32 to vector<16x256xf32>
    %6 = arith.subf %5, %3 : vector<16x256xf32>
    %7 = math.exp %6 : vector<16x256xf32>
    %cst_4 = arith.constant 1.000000e+00 : f32
    %8 = vector.broadcast %cst_4 : f32 to vector<16x256xf32>
    %9 = arith.addf %8, %7 : vector<16x256xf32>
    %10 = tpu.reciprocal %9 {approx = true} : vector<16x256xf32> -> vector<16x256xf32>
    %c0_5 = arith.constant 0 : index
    %c0_6 = arith.constant 0 : index
    %11 = vector.load %arg7[%c0_5, %c0_6] : memref<1x256xf32, #tpu.memory_space<vmem>>, vector<1x256xf32>
    %12 = arith.mulf %4, %10 : vector<16x256xf32>
    %cst_7 = arith.constant dense<0.000000e+00> : vector<256xf32>
    %13 = vector.multi_reduction <add>, %12, %cst_7 [0] : vector<16x256xf32> to vector<256xf32>
    %14 = vector.shape_cast %13 : vector<256xf32> to vector<1x256xf32>
    %15 = arith.addf %11, %14 : vector<1x256xf32>
    %c0_8 = arith.constant 0 : index
    %c0_9 = arith.constant 0 : index
    %16 = vector.load %arg7[%c0_8, %c0_9] : memref<1x256xf32, #tpu.memory_space<vmem>>, vector<1x256xf32>
    tpu.vector_store %arg7[%c0_8, %c0_9], %15 {strides = array<i32>} : memref<1x256xf32, #tpu.memory_space<vmem>>, vector<1x256xf32>,
    %c0_10 = arith.constant 0 : index
    %c0_11 = arith.constant 0 : index
    %17 = vector.load %arg8[%c0_10, %c0_11] : memref<1x256xf32, #tpu.memory_space<vmem>>, vector<1x256xf32>
    %cst_12 = arith.constant dense<0.000000e+00> : vector<256xf32>
    %18 = vector.multi_reduction <add>, %10, %cst_12 [0] : vector<16x256xf32> to vector<256xf32>
    %19 = vector.shape_cast %18 : vector<256xf32> to vector<1x256xf32>
    %20 = arith.addf %17, %19 : vector<1x256xf32>
    %c0_13 = arith.constant 0 : index
    %c0_14 = arith.constant 0 : index
    %21 = vector.load %arg8[%c0_13, %c0_14] : memref<1x256xf32, #tpu.memory_space<vmem>>, vector<1x256xf32>
    tpu.vector_store %arg8[%c0_13, %c0_14], %20 {strides = array<i32>} : memref<1x256xf32, #tpu.memory_space<vmem>>, vector<1x256xf32>,
    %c0_15 = arith.constant 0 : index
    %c0_16 = arith.constant 0 : index
    %22 = vector.load %arg9[%c0_15, %c0_16] : memref<1x256xf32, #tpu.memory_space<vmem>>, vector<1x256xf32>
    %cst_17 = arith.constant dense<0.000000e+00> : vector<256xf32>
    %23 = vector.multi_reduction <add>, %4, %cst_17 [0] : vector<16x256xf32> to vector<256xf32>
    %24 = vector.shape_cast %23 : vector<256xf32> to vector<1x256xf32>
    %25 = arith.addf %22, %24 : vector<1x256xf32>
    %c0_18 = arith.constant 0 : index
    %c0_19 = arith.constant 0 : index
    %26 = vector.load %arg9[%c0_18, %c0_19] : memref<1x256xf32, #tpu.memory_space<vmem>>, vector<1x256xf32>
    tpu.vector_store %arg9[%c0_18, %c0_19], %25 {strides = array<i32>} : memref<1x256xf32, #tpu.memory_space<vmem>>, vector<1x256xf32>,
    %c0_i32_20 = arith.constant 0 : i32
    %27 = arith.cmpi eq, %arg1, %c0_i32_20 : i32
    %28 = arith.extui %27 : i1 to i32
    %c0_i32_21 = arith.constant 0 : i32
    %29 = arith.cmpi ne, %28, %c0_i32_21 : i32
    scf.if %29 {
      %c0_22 = arith.constant 0 : index
      %c0_23 = arith.constant 0 : index
      %30 = vector.load %arg7[%c0_22, %c0_23] : memref<1x256xf32, #tpu.memory_space<vmem>>, vector<1x256xf32>
      %31 = vector.shape_cast %30 : vector<1x256xf32> to vector<1x1x256xf32>
      %cst_24 = arith.constant dense<0.000000e+00> : vector<1xf32>
      %32 = vector.multi_reduction <add>, %31, %cst_24 [1, 2] : vector<1x1x256xf32> to vector<1xf32>
      %33 = vector.shape_cast %32 : vector<1xf32> to vector<1x1x1xf32>
      %34 = vector.extract %33[0, 0, 0] : f32 from vector<1x1x1xf32>
      %35 = vector.broadcast %34 : f32 to vector<1x1xf32>
      %36 = vector.shape_cast %35 : vector<1x1xf32> to vector<1x1x1xf32>
      %c0_25 = arith.constant 0 : index
      %c0_26 = arith.constant 0 : index
      %c0_27 = arith.constant 0 : index
      %37 = vector.load %arg4[%c0_25, %c0_26, %c0_27] : memref<1x1x1xf32, #tpu.memory_space<vmem>>, vector<1x1x1xf32>
      tpu.vector_store %arg4[%c0_25, %c0_26, %c0_27], %36 {strides = array<i32>} : memref<1x1x1xf32, #tpu.memory_space<vmem>>, vector<1x1x1xf32>,
      %c0_28 = arith.constant 0 : index
      %c0_29 = arith.constant 0 : index
      %38 = vector.load %arg8[%c0_28, %c0_29] : memref<1x256xf32, #tpu.memory_space<vmem>>, vector<1x256xf32>
      %39 = vector.shape_cast %38 : vector<1x256xf32> to vector<1x1x256xf32>
      %cst_30 = arith.constant dense<0.000000e+00> : vector<1xf32>
      %40 = vector.multi_reduction <add>, %39, %cst_30 [1, 2] : vector<1x1x256xf32> to vector<1xf32>
      %41 = vector.shape_cast %40 : vector<1xf32> to vector<1x1x1xf32>
      %42 = vector.extract %41[0, 0, 0] : f32 from vector<1x1x1xf32>
      %43 = vector.broadcast %42 : f32 to vector<1x1xf32>
      %44 = vector.shape_cast %43 : vector<1x1xf32> to vector<1x1x1xf32>
      %c0_31 = arith.constant 0 : index
      %c0_32 = arith.constant 0 : index
      %c0_33 = arith.constant 0 : index
      %45 = vector.load %arg5[%c0_31, %c0_32, %c0_33] : memref<1x1x1xf32, #tpu.memory_space<vmem>>, vector<1x1x1xf32>
      tpu.vector_store %arg5[%c0_31, %c0_32, %c0_33], %44 {strides = array<i32>} : memref<1x1x1xf32, #tpu.memory_space<vmem>>, vector<1x1x1xf32>,
      %c0_34 = arith.constant 0 : index
      %c0_35 = arith.constant 0 : index
      %46 = vector.load %arg9[%c0_34, %c0_35] : memref<1x256xf32, #tpu.memory_space<vmem>>, vector<1x256xf32>
      %47 = vector.shape_cast %46 : vector<1x256xf32> to vector<1x1x256xf32>
      %cst_36 = arith.constant dense<0.000000e+00> : vector<1xf32>
      %48 = vector.multi_reduction <add>, %47, %cst_36 [1, 2] : vector<1x1x256xf32> to vector<1xf32>
      %49 = vector.shape_cast %48 : vector<1xf32> to vector<1x1x1xf32>
      %50 = vector.extract %49[0, 0, 0] : f32 from vector<1x1x1xf32>
      %51 = vector.broadcast %50 : f32 to vector<1x1xf32>
      %52 = vector.shape_cast %51 : vector<1x1xf32> to vector<1x1x1xf32>
      %c0_37 = arith.constant 0 : index
      %c0_38 = arith.constant 0 : index
      %c0_39 = arith.constant 0 : index
      %53 = vector.load %arg6[%c0_37, %c0_38, %c0_39] : memref<1x1x1xf32, #tpu.memory_space<vmem>>, vector<1x1x1xf32>
      tpu.vector_store %arg6[%c0_37, %c0_38, %c0_39], %52 {strides = array<i32>} : memref<1x1x1xf32, #tpu.memory_space<vmem>>, vector<1x1x1xf32>,
    } else {
    }
    return
  }
  func.func @transform_0(%arg0: i32, %arg1: i32) -> (i32, i32) {
    %c0_i32 = arith.constant 0 : i32
    return %arg0, %arg1 : i32, i32
  }
  func.func @transform_1(%arg0: i32, %arg1: i32) -> (i32, i32) {
    %c0_i32 = arith.constant 0 : i32
    return %arg0, %arg1 : i32, i32
  }
  func.func @transform_2(%arg0: i32, %arg1: i32) -> (i32, i32, i32) {
    %c0_i32 = arith.constant 0 : i32
    %c0_i32_0 = arith.constant 0 : i32
    %c0_i32_1 = arith.constant 0 : i32
    return %arg0, %c0_i32, %c0_i32_0 : i32, i32, i32
  }
  func.func @transform_3(%arg0: i32, %arg1: i32) -> (i32, i32, i32) {
    %c0_i32 = arith.constant 0 : i32
    %c0_i32_0 = arith.constant 0 : i32
    %c0_i32_1 = arith.constant 0 : i32
    return %arg0, %c0_i32, %c0_i32_0 : i32, i32, i32
  }
  func.func @transform_4(%arg0: i32, %arg1: i32) -> (i32, i32, i32) {
    %c0_i32 = arith.constant 0 : i32
    %c0_i32_0 = arith.constant 0 : i32
    %c0_i32_1 = arith.constant 0 : i32
    return %arg0, %c0_i32, %c0_i32_0 : i32, i32, i32
  }
}

</mosaic_0001>

<bundles_post_ra>
// kernel: tpu_custom_call.1
= control target key start
LH: loop header
LB: loop body
LE: loop exit
PB: predicated region body
PF: predicated region fallthrough
CT: control target
= control target key end

     0   :  { %10 = vsyncpa [#allocation6], 0  ;;  %s509_s0 = inlined_call_operand.hbm [shape: f32[16,256], index: 0, kind: input, shape index: {}]   ;;  %s510_s1 = inlined_call_operand.hbm [shape: f32[16,256], index: 1, kind: input, shape index: {}]   ;;  %s511_s2 = inlined_call_operand.hbm [shape: f32[1,1,1], index: 2, kind: output, shape index: {0}]   ;;  %s512_s3 = inlined_call_operand.hbm [shape: f32[1,1,1], index: 3, kind: output, shape index: {1}]   ;;  %s513_s4 = inlined_call_operand.hbm [shape: f32[1,1,1], index: 4, kind: output, shape index: {2}]  }
   0x1   :  { %11 = vsyncpa [#allocation9], 0 }
   0x2   :  { %12 = vsyncpa [#allocation7], 0 }
   0x3   :  { %13 = vsyncpa [#allocation12], 0  ;;  %s18_s17 = sshll.u32 %s509_s0, 4  ;;  %s433_s18 = smov [#allocation5]   ;;  %s19_s17 = int_to_ptr.hbm [resolvable:$true] %s18_s17 }
   0x4   :  { %s20_s19 = sshll.u32 %s433_s18, 4  ;;  %s31_s22 = sshll.u32 %s510_s1, 4  ;;  %s21_s19 = int_to_ptr.vmem [resolvable:$true] %s20_s19  ;;  %s32_s22 = int_to_ptr.hbm [resolvable:$true] %s31_s22 }
   0x5   :  { %s434_s23 = smov 256   ;;  %s435_s24 = smov 16  }
   0x6   :  { %26 = dma.hbm_to_vmem [thread:$0]  %s19_s17, 512, %s21_s19, [#allocation6], %s434_s23, %s434_s23, %s435_s24  }
   0x7   :  { %s436_s25 = smov [#allocation8]  }
   0x8   :  { %s33_s26 = sshll.u32 %s436_s25, 4  ;;  %s34_s26 = int_to_ptr.vmem [resolvable:$true] %s33_s26 }
   0x9   :  { %39 = dma.hbm_to_vmem [thread:$0]  %s32_s22, 512, %s34_s26, [#allocation9], %s434_s23, %s434_s23, %s435_s24  }
   0xa   :  { %425 = dma.done.wait [#allocation6], 512  }
   0xb   :  { %426 = vsyncadd [#allocation6], 4294966784 }
   0xc   :  { %427 = dma.done.wait [#allocation9], 512  }
   0xd   :  { %428 = vsyncadd [#allocation9], 4294966784  ;;  %v52_v0 = vlaneseq  ;;  %v437_v2 = vmov 0.0   ;;  %v59_v3 = vld [vmem:[#allocation5] sm:$0xff]  ;;  %v60_v4 = vld [vmem:[#allocation5 + $0x8] sm:$0xff]  ;;  %vm109_vm1 = vcmask 1040384  }
   0xe   :  { %v61_v5 = vld [vmem:[#allocation5 + $0x10] sm:$0xff]  ;;  %v62_v6 = vld [vmem:[#allocation5 + $0x18] sm:$0xff]  ;;  %v63_v7 = vld [vmem:[#allocation8] sm:$0xff]  ;;  %v67_v8 = vsub.f32 0.0, %v59_v3  ;;  %v68_v9 = vsub.f32 0.0, %v60_v4  ;;  %s233_s27 = sshll.u32 %s511_s2, 4  ;;  %s234_s27 = int_to_ptr.hbm [resolvable:$true] %s233_s27 }
   0xf   :  { %vm472_vm0 = vcmp.lt.s32.totalorder %v52_v0, 256  ;;  %v69_v10 = vsub.f32 0.0, %v61_v5  ;;  %v64_v11 = vld [vmem:[#allocation8 + $0x8] sm:$0xff]  ;;  %v65_v12 = vld [vmem:[#allocation8 + $0x10] sm:$0xff]  ;;  %v66_v13 = vld [vmem:[#allocation8 + $0x18] sm:$0xff]  ;;  %v70_v14 = vsub.f32 0.0, %v62_v6 }
  0x10   :  { %56 = vst.msk [vmem:[#allocation2] sm:$0x3] %vm472_vm0, %v437_v2  ;;  %v71_v15 = vmul.f32 1.442695, %v67_v8  ;;  %v73_v16 = vmul.f32 1.442695, %v68_v9  ;;  %v141_v18 = vadd.f32 %v65_v12, %v63_v7  ;;  %v148_v20 = vadd.f32 %v66_v13, %v64_v11 }
  0x11   :  { %57 = vst.msk [vmem:[#allocation3] sm:$0x3] %vm472_vm0, %v437_v2  ;;  %v75_v17 = vmul.f32 1.442695, %v69_v10  ;;  %v77_v19 = vmul.f32 1.442695, %v70_v14 }
  0x12   :  { %58 = vst.msk [vmem:[#allocation4] sm:$0x3] %vm472_vm0, %v437_v2  ;;  %289 = vpow2.f32 %v71_v15  ;;  %v142_v21 = vrot.slane %v141_v18, 4  ;;  %v149_v22 = vrot.slane %v148_v20, 4  ;;  %s438_s28 = smov [#allocation10]   ;;  %vm184_vm2 = vcmask 0  }
  0x13   :  { %291 = vpow2.f32 %v73_v16  ;;  %s231_s29 = sshll.u32 %s438_s28, 4  ;;  %s439_s5 = smov [#allocation11]   ;;  %s232_s29 = int_to_ptr.vmem [resolvable:$true] %s231_s29 }
  0x14   :  { %293 = vpow2.f32 %v75_v17  ;;  %v143_v23 = vadd.f32 %v142_v21, %v141_v18  ;;  %v150_v24 = vadd.f32 %v149_v22, %v148_v20  ;;  %s242_s6 = sshll.u32 %s439_s5, 4  ;;  %s244_s9 = sshll.u32 %s512_s3, 4  ;;  %s243_s6 = int_to_ptr.vmem [resolvable:$true] %s242_s6  ;;  %s245_s9 = int_to_ptr.hbm [resolvable:$true] %s244_s9 }
  0x15   :  { %295 = vpow2.f32 %v77_v19  ;;  %s440_s10 = smov [#allocation13]   ;;  %s255_s13 = sshll.u32 %s513_s4, 4  ;;  %s256_s13 = int_to_ptr.hbm [resolvable:$true] %s255_s13 }
  0x16   :  { %v144_v25 = vrot.slane %v143_v23, 2  ;;  %v151_v26 = vrot.slane %v150_v24, 2  ;;  %s253_s11 = sshll.u32 %s440_s10, 4  ;;  %s254_s11 = int_to_ptr.vmem [resolvable:$true] %s253_s11 }
  0x18   :  { %v290_v27 = vpop.eup %289  ;;  %v145_v28 = vadd.f32 %v144_v25, %v143_v23  ;;  %v152_v31 = vadd.f32 %v151_v26, %v150_v24  ;;  %v118_v24 = vld [vmem:[#allocation3] sm:$0x3]  ;;  %v87_v26 = vld [vmem:[#allocation2] sm:$0x3] }
  0x19   :  { %v292_v29 = vpop.eup %291  ;;  %v79_v30 = vadd.f32 1.0, %v290_v27  ;;  %v140_v42 = vld [vmem:[#allocation4] sm:$0x3] }
  0x1a   :  { %v294_v32 = vpop.eup %293  ;;  %v80_v33 = vadd.f32 1.0, %v292_v29  ;;  %v146_v34 = vrot.slane %v145_v28, 1  ;;  %v153_v37 = vrot.slane %v152_v31, 1 }
  0x1b   :  { %v296_v35 = vpop.eup %295  ;;  %v81_v36 = vadd.f32 1.0, %v294_v32  ;;  %297 = vrcp.f32 %v79_v30 }
  0x1c   :  { %v82_v38 = vadd.f32 1.0, %v296_v35  ;;  %299 = vrcp.f32 %v80_v33  ;;  %v147_v39 = vadd.f32 %v146_v34, %v145_v28  ;;  %v154_v40 = vadd.f32 %v153_v37, %v152_v31 }
  0x1d   :  { %301 = vrcp.f32 %v81_v36 }
  0x1e   :  { %303 = vrcp.f32 %v82_v38  ;;  %v157_v41 = vrot.slane %v154_v40, 7 }
  0x20   :  { %v158_v44 = vsel %vm109_vm1, %v147_v39, %v157_v41 }
  0x21   :  { %v298_v43 = vpop.eup %297  ;;  %v160_v47 = vadd.f32 %v158_v44, %v140_v42 }
  0x22   :  { %v300_v45 = vpop.eup %299  ;;  %v88_v46 = vmul.f32 %v298_v43, %v63_v7 }
  0x23   :  { %v302_v48 = vpop.eup %301  ;;  %v89_v49 = vmul.f32 %v300_v45, %v64_v11  ;;  %161 = vst.msk [vmem:[#allocation4] sm:$0x3] %vm472_vm0, %v160_v47 }
  0x24   :  { %v304_v50 = vpop.eup %303  ;;  %v90_v51 = vmul.f32 %v302_v48, %v65_v12  ;;  %v119_v52 = vadd.f32 %v302_v48, %v298_v43 }
  0x25   :  { %v91_v53 = vmul.f32 %v304_v50, %v66_v13  ;;  %v126_v54 = vadd.f32 %v304_v50, %v300_v45 }
  0x26   :  { %v92_v55 = vadd.f32 %v90_v51, %v88_v46  ;;  %v120_v56 = vrot.slane %v119_v52, 4 }
  0x27   :  { %v99_v57 = vadd.f32 %v91_v53, %v89_v49  ;;  %v127_v58 = vrot.slane %v126_v54, 4 }
  0x28   :  { %v93_v59 = vrot.slane %v92_v55, 4  ;;  %v121_v60 = vadd.f32 %v120_v56, %v119_v52 }
  0x29   :  { %v100_v61 = vrot.slane %v99_v57, 4  ;;  %v128_v62 = vadd.f32 %v127_v58, %v126_v54 }
  0x2a   :  { %v94_v63 = vadd.f32 %v93_v59, %v92_v55  ;;  %v122_v0 = vrot.slane %v121_v60, 2  ;;  %v206_v4 = vld [vmem:[#allocation4] sm:$0x3] }
  0x2b   :  { %v101_v2 = vadd.f32 %v100_v61, %v99_v57  ;;  %v129_v3 = vrot.slane %v128_v62, 2  ;;  %v208_v7 = vperm.slane %v206_v4, 0  ;;  %v209_v8 = vperm.slane %v206_v4, 1 }
  0x2c   :  { %v95_v5 = vrot.slane %v94_v63, 2  ;;  %v123_v6 = vadd.f32 %v122_v0, %v121_v60 }
  0x2d   :  { %v102_v9 = vrot.slane %v101_v2, 2  ;;  %v130_v10 = vadd.f32 %v129_v3, %v128_v62  ;;  %v212_v13 = vsel %vm109_vm1, %v208_v7, 0.0  ;;  %v213_v14 = vsel %vm109_vm1, %v209_v8, 0.0 }
  0x2e   :  { %v96_v11 = vadd.f32 %v95_v5, %v94_v63  ;;  %v124_v12 = vrot.slane %v123_v6, 1  ;;  %v214_v17 = vadd.f32 %v213_v14, %v212_v13 }
  0x2f   :  { %v103_v15 = vadd.f32 %v102_v9, %v101_v2  ;;  %v131_v16 = vrot.slane %v130_v10, 1 }
  0x30   :  { %v97_v18 = vrot.slane %v96_v11, 1  ;;  %v125_v20 = vadd.f32 %v124_v12, %v123_v6  ;;  %215 = vadd.xlane.f32.xlu1 %v214_v17 }
  0x31   :  { %v104_v19 = vrot.slane %v103_v15, 1  ;;  %v132_v21 = vadd.f32 %v131_v16, %v130_v10 }
  0x32   :  { %v98_v22 = vadd.f32 %v97_v18, %v96_v11 }
  0x33   :  { %v105_v23 = vadd.f32 %v104_v19, %v103_v15  ;;  %v135_v25 = vrot.slane %v132_v21, 7 }
  0x35   :  { %v108_v27 = vrot.slane %v105_v23, 7  ;;  %v136_v28 = vsel %vm109_vm1, %v125_v20, %v135_v25 }
  0x36   :  { %v138_v29 = vadd.f32 %v136_v28, %v118_v24 }
  0x37   :  { %v110_v30 = vsel %vm109_vm1, %v98_v22, %v108_v27 }
  0x38   :  { %v112_v31 = vadd.f32 %v110_v30, %v87_v26  ;;  %139 = vst.msk [vmem:[#allocation3] sm:$0x3] %vm472_vm0, %v138_v29 }
  0x3a   :  { %117 = vst.msk [vmem:[#allocation2] sm:$0x3] %vm472_vm0, %v112_v31 }
  0x3f   :  { %v186_v33 = vld [vmem:[#allocation3] sm:$0x3] }
  0x40   :  { %v188_v38 = vperm.slane %v186_v33, 0  ;;  %v189_v39 = vperm.slane %v186_v33, 1 }
  0x41   :  { %v165_v32 = vld [vmem:[#allocation2] sm:$0x3] }
  0x42   :  { %v167_v34 = vperm.slane %v165_v32, 0  ;;  %v168_v35 = vperm.slane %v165_v32, 1  ;;  %v192_v41 = vsel %vm109_vm1, %v188_v38, 0.0  ;;  %v193_v42 = vsel %vm109_vm1, %v189_v39, 0.0 }
  0x43   :  { %v194_v43 = vadd.f32 %v193_v42, %v192_v41 }
  0x44   :  { %v171_v36 = vsel %vm109_vm1, %v167_v34, 0.0  ;;  %v172_v37 = vsel %vm109_vm1, %v168_v35, 0.0 }
  0x45   :  { %v173_v40 = vadd.f32 %v172_v37, %v171_v36 }
  0x47   :  { %174 = vadd.xlane.f32.xlu0 %v173_v40 }
  0x4f   :  { %195 = vadd.xlane.f32.xlu0 %v194_v43 }
  0xa3   :  { %v216_v1 = vpop.xlane.xlu1 %215 }
  0xa4   :  { %v217_v45 = vrot.slane %v216_v1, 4 }
  0xa6   :  { %v218_v48 = vadd.f32 %v217_v45, %v216_v1 }
  0xa8   :  { %v219_v51 = vrot.slane %v218_v48, 2 }
  0xaa   :  { %v220_v57 = vadd.f32 %v219_v51, %v218_v48 }
  0xac   :  { %v221_v60 = vrot.slane %v220_v57, 1 }
  0xae   :  { %v222_v63 = vadd.f32 %v221_v60, %v220_v57 }
  0xba   :  { %v175_v44 = vpop.xlane.xlu0 %174 }
  0xbb   :  { %v176_v46 = vrot.slane %v175_v44, 4 }
  0xbd   :  { %v177_v47 = vadd.f32 %v176_v46, %v175_v44 }
  0xbf   :  { %v178_v49 = vrot.slane %v177_v47, 2 }
  0xc1   :  { %v179_v50 = vadd.f32 %v178_v49, %v177_v47 }
  0xc2   :  { %v196_v52 = vpop.xlane.xlu0 %195 }
  0xc3   :  { %v197_v53 = vrot.slane %v196_v52, 4  ;;  %v180_v54 = vrot.slane %v179_v50, 1 }
  0xc5   :  { %v198_v55 = vadd.f32 %v197_v53, %v196_v52  ;;  %v181_v56 = vadd.f32 %v180_v54, %v179_v50 }
  0xc7   :  { %v199_v58 = vrot.slane %v198_v55, 2  ;;  %275 = vpush %v181_v56 }
  0xc9   :  { %v200_v59 = vadd.f32 %v199_v58, %v198_v55 }
  0xcb   :  { %v201_v61 = vrot.slane %v200_v59, 1 }
  0xcd   :  { %v202_v62 = vadd.f32 %v201_v61, %v200_v59 }
  0xcf   :  { %277 = vpush %v202_v62 }
  0xd0   :  { %279 = vpush %v222_v63 }
  0xf8   :  { %s276_s30 = spop %275 }
  0xf9   :  { %v183_v0 = vstv %s276_s30 }
  0xfa   :  { %185 = vst.msk [vmem:[#allocation10] sm:$0x1] %vm184_vm2, %v183_v0 }
  0xfb   :  { %236 = dma.vmem_to_hbm [thread:$0]  %s232_s29, 16, %s234_s27, [#allocation7]  }
 0x100   :  { %s278_s14 = spop %277 }
 0x101   :  { %v204_v2 = vstv %s278_s14  ;;  %s280_s15 = spop %279 }
 0x102   :  { %205 = vst.msk [vmem:[#allocation11] sm:$0x1] %vm184_vm2, %v204_v2  ;;  %v224_v3 = vstv %s280_s15 }
 0x103   :  { %225 = vst.msk [vmem:[#allocation13] sm:$0x1] %vm184_vm2, %v224_v3  ;;  %247 = dma.vmem_to_hbm [thread:$0]  %s243_s6, 16, %s245_s9, [#allocation12]  }
 0x104   :  { %258 = dma.vmem_to_hbm [thread:$0]  %s254_s11, 16, %s256_s13, [#allocation12]  }
 0x105   :  { %429 = dma.done.wait [#allocation7], 16  }
 0x106   :  { %430 = vsyncadd [#allocation7], 4294967280 }
 0x107   :  { %431 = dma.done.wait [#allocation12], 32  }
 0x108   :  { %432 = vsyncadd [#allocation12], 4294967264 }
 0x109   :  { %271 = vsyncpa [#allocation6], 1 }
 0x10a   :  { %272 = vsyncpa [#allocation9], 1 }
 0x10b   :  { %273 = vsyncpa [#allocation7], 1 }
 0x10c   :  { %274 = vsyncpa [#allocation12], 1 }

</bundles_post_ra>
